<compile_context>
chip_gen: v7x
topology: tpu7x:2x2x1
jax: 0.10.0
libtpu: 0.0.40
codegen_flags: <defaults>
</compile_context>

<pallas_src>
import jax
import jax.numpy as jnp
from jax.experimental import pallas as pl
from jax.experimental.pallas import tpu as pltpu

_IN, _H1, _H2, _OUT = 128, 256, 512, 40
_OUT_PAD = 128  # lane-dense padded fc3 width (>= _OUT, multiple of 128)


def _transient_head_kernel(x_ref, w1_ref, b1_ref, w2_ref, b2_ref,
                           w3_ref, b3_ref, o_ref):
    # bf16 operands on the MXU, f32 accumulation + f32 elementwise.
    x = x_ref[...]                                                  # (TM, 128) bf16

    # fc1 + relu
    h1 = jnp.dot(x, w1_ref[...], preferred_element_type=jnp.float32)
    h1 = jnp.maximum(h1 + b1_ref[...], 0.0)                         # (TM, 256) f32

    # fc2 + relu
    h2 = jnp.dot(h1.astype(jnp.bfloat16), w2_ref[...],
                 preferred_element_type=jnp.float32)
    h2 = jnp.maximum(h2 + b2_ref[...], 0.0)                         # (TM, 512) f32

    # fc3 (padded to 128 lanes) + sigmoid
    h3 = jnp.dot(h2.astype(jnp.bfloat16), w3_ref[...],
                 preferred_element_type=jnp.float32)
    h3 = h3 + b3_ref[...]                                           # (TM, 128) f32

    # sigmoid = 1 / (1 + exp(-x)): exp and approx reciprocal both issue on the
    # otherwise-idle EUP slot, keeping the epilogue off the VALU.
    e = jnp.exp(-h3)
    o_ref[...] = pl.reciprocal(1.0 + e, approx=True).astype(o_ref.dtype)


def transient_head(x, w1, b1, w2, b2, w3, b3, *, tm=256):
    """TransientHead forward. x: (B, 128) float32. Returns (B, 40) float32."""
    B = x.shape[0]

    # --- layout / dtype plumbing (done once, outside the kernel) ---
    # fc3 padded to 128 output lanes so kernel output stores are lane-dense.
    w3p = jnp.zeros((_H2, _OUT_PAD), jnp.float32).at[:, :_OUT].set(w3)
    b3p = jnp.zeros((_OUT_PAD,), jnp.float32).at[:_OUT].set(b3)

    # bf16 MXU operands (halves weight + input DMA bytes); biases stay f32.
    xb = x.astype(jnp.bfloat16)
    w1b = w1.astype(jnp.bfloat16)
    w2b = w2.astype(jnp.bfloat16)
    w3b = w3p.astype(jnp.bfloat16)
    b1r = b1.reshape(1, _H1).astype(jnp.float32)
    b2r = b2.reshape(1, _H2).astype(jnp.float32)
    b3r = b3p.reshape(1, _OUT_PAD).astype(jnp.float32)

    # --- batch tiling: pad B up to a multiple of the (f32-aligned) tile ---
    tm_eff = min(tm, max(8, -(-B // 8) * 8))       # small B -> one small tile
    b_pad = -(-B // tm_eff) * tm_eff
    if b_pad != B:
        xb = jnp.pad(xb, ((0, b_pad - B), (0, 0)))
    grid = (b_pad // tm_eff,)

    # Weights/biases: constant index_map -> VMEM-resident across all tiles.
    const = lambda a: pl.BlockSpec(a.shape, lambda i: (0, 0))

    flops = 2 * b_pad * (_IN * _H1 + _H1 * _H2 + _H2 * _OUT_PAD)
    bytes_accessed = (xb.size * 2
                      + (w1b.size + w2b.size + w3b.size) * 2
                      + (b1r.size + b2r.size + b3r.size) * 4
                      + b_pad * _OUT_PAD * 4)

    out = pl.pallas_call(
        _transient_head_kernel,
        out_shape=jax.ShapeDtypeStruct((b_pad, _OUT_PAD), jnp.float32),
        grid=grid,
        in_specs=[
            pl.BlockSpec((tm_eff, _IN), lambda i: (i, 0)),   # x batch tile
            const(w1b), const(b1r),
            const(w2b), const(b2r),
            const(w3b), const(b3r),
        ],
        out_specs=pl.BlockSpec((tm_eff, _OUT_PAD), lambda i: (i, 0)),
        compiler_params=pltpu.CompilerParams(
            dimension_semantics=("parallel",),
            vmem_limit_bytes=16 << 20),
        cost_estimate=pl.CostEstimate(
            flops=flops,
            transcendentals=b_pad * _OUT_PAD,
            bytes_accessed=bytes_accessed),
    )(xb, w1b, b1r, w2b, b2r, w3b, b3r)

    # Drop batch padding rows and the 40->128 lane padding.
    return out[:B, :_OUT]


def _init_linear(key, fan_in, fan_out):
    """Deterministic PyTorch-style uniform(-1/sqrt(fan_in), 1/sqrt(fan_in))."""
    kw, kb = jax.random.split(key)
    bound = 1.0 / (fan_in ** 0.5)
    w = jax.random.uniform(kw, (fan_in, fan_out), jnp.float32, -bound, bound)
    b = jax.random.uniform(kb, (fan_out,), jnp.float32, -bound, bound)
    return w, b


def _reference(x, w1, b1, w2, b2, w3, b3):
    h1 = jnp.maximum(x @ w1 + b1, 0.0)
    h2 = jnp.maximum(h1 @ w2 + b2, 0.0)
    return jax.nn.sigmoid(h2 @ w3 + b3)


if __name__ == "__main__":
    key = jax.random.PRNGKey(0)
    kx, k1, k2, k3 = jax.random.split(key, 4)

    w1, b1 = _init_linear(k1, 128, 256)
    w2, b2 = _init_linear(k2, 256, 512)
    w3, b3 = _init_linear(k3, 512, 40)

    # Small-batch case (single tile, grid of 1).
    B = 8
    x = jax.random.normal(kx, (B, 128), jnp.float32)
    out = jax.block_until_ready(transient_head(x, w1, b1, w2, b2, w3, b3))
    ref = _reference(x, w1, b1, w2, b2, w3, b3)
    assert out.shape == (B, _OUT), out.shape
    err = float(jnp.max(jnp.abs(out - ref)))
    assert err < 2e-2, f"mismatch vs reference (max abs err {err})"

    # Ragged-batch case exercising the batch grid + padding path.
    B2 = 300
    x2 = jax.random.normal(jax.random.PRNGKey(7), (B2, 128), jnp.float32)
    out2 = jax.block_until_ready(
        transient_head(x2, w1, b1, w2, b2, w3, b3, tm=128))
    ref2 = _reference(x2, w1, b1, w2, b2, w3, b3)
    assert out2.shape == (B2, _OUT), out2.shape
    err2 = float(jnp.max(jnp.abs(out2 - ref2)))
    assert err2 < 2e-2, f"mismatch vs reference (max abs err {err2})"

    print("KERNEL_OK")
</pallas_src>

<mosaic_0001>
module attributes {stable_mosaic.version = 11 : i64} {
  func.func @_transient_head_kernel(%arg0: i32, %arg1: memref<8x128xbf16, #tpu.memory_space<vmem>>, %arg2: memref<128x256xbf16, #tpu.memory_space<vmem>>, %arg3: memref<1x256xf32, #tpu.memory_space<vmem>>, %arg4: memref<256x512xbf16, #tpu.memory_space<vmem>>, %arg5: memref<1x512xf32, #tpu.memory_space<vmem>>, %arg6: memref<512x128xbf16, #tpu.memory_space<vmem>>, %arg7: memref<1x128xf32, #tpu.memory_space<vmem>>, %arg8: memref<8x128xf32, #tpu.memory_space<vmem>>) attributes {dimension_semantics = [#tpu.dimension_semantics<parallel>], iteration_bounds = array<i64: 1>, scalar_prefetch = 0 : i64, scratch_operands = 0 : i64, tpu.core_type = #tpu.core_type<tc>, window_params = [{transform_indices = @transform_0, window_bounds = array<i64: 8, 128>}, {pipeline_mode = #tpu.pipeline_mode<synchronous>, transform_indices = @transform_1, window_bounds = array<i64: 128, 256>}, {pipeline_mode = #tpu.pipeline_mode<synchronous>, transform_indices = @transform_2, window_bounds = array<i64: 1, 256>}, {pipeline_mode = #tpu.pipeline_mode<synchronous>, transform_indices = @transform_3, window_bounds = array<i64: 256, 512>}, {pipeline_mode = #tpu.pipeline_mode<synchronous>, transform_indices = @transform_4, window_bounds = array<i64: 1, 512>}, {pipeline_mode = #tpu.pipeline_mode<synchronous>, transform_indices = @transform_5, window_bounds = array<i64: 512, 128>}, {pipeline_mode = #tpu.pipeline_mode<synchronous>, transform_indices = @transform_6, window_bounds = array<i64: 1, 128>}, {transform_indices = @transform_7, window_bounds = array<i64: 8, 128>}]} {
    %c0 = arith.constant 0 : index
    %c0_0 = arith.constant 0 : index
    %0 = vector.load %arg1[%c0, %c0_0] : memref<8x128xbf16, #tpu.memory_space<vmem>>, vector<8x128xbf16>
    %c0_1 = arith.constant 0 : index
    %c0_2 = arith.constant 0 : index
    %1 = vector.load %arg2[%c0_1, %c0_2] : memref<128x256xbf16, #tpu.memory_space<vmem>>, vector<128x256xbf16>
    %cst = arith.constant dense<0.000000e+00> : vector<8x256xf32>
    %2 = tpu.matmul %0, %1, %cst {dimension_numbers = #tpu.dot_dimension_numbers<[1], [0], [0], [1], [0, 0, 1, 1], [], []>} : vector<8x128xbf16>, vector<128x256xbf16>, vector<8x256xf32> -> vector<8x256xf32>
    %c0_3 = arith.constant 0 : index
    %c0_4 = arith.constant 0 : index
    %3 = vector.load %arg3[%c0_3, %c0_4] : memref<1x256xf32, #tpu.memory_space<vmem>>, vector<1x256xf32>
    %4 = vector.broadcast %3 : vector<1x256xf32> to vector<8x256xf32>
    %5 = arith.addf %2, %4 : vector<8x256xf32>
    %cst_5 = arith.constant 0.000000e+00 : f32
    %6 = vector.broadcast %cst_5 : f32 to vector<8x256xf32>
    %7 = arith.maximumf %5, %6 : vector<8x256xf32>
    %8 = arith.truncf %7 : vector<8x256xf32> to vector<8x256xbf16>
    %c0_6 = arith.constant 0 : index
    %c0_7 = arith.constant 0 : index
    %9 = vector.load %arg4[%c0_6, %c0_7] : memref<256x512xbf16, #tpu.memory_space<vmem>>, vector<256x512xbf16>
    %cst_8 = arith.constant dense<0.000000e+00> : vector<8x512xf32>
    %10 = tpu.matmul %8, %9, %cst_8 {dimension_numbers = #tpu.dot_dimension_numbers<[1], [0], [0], [1], [0, 0, 1, 1], [], []>} : vector<8x256xbf16>, vector<256x512xbf16>, vector<8x512xf32> -> vector<8x512xf32>
    %c0_9 = arith.constant 0 : index
    %c0_10 = arith.constant 0 : index
    %11 = vector.load %arg5[%c0_9, %c0_10] : memref<1x512xf32, #tpu.memory_space<vmem>>, vector<1x512xf32>
    %12 = vector.broadcast %11 : vector<1x512xf32> to vector<8x512xf32>
    %13 = arith.addf %10, %12 : vector<8x512xf32>
    %cst_11 = arith.constant 0.000000e+00 : f32
    %14 = vector.broadcast %cst_11 : f32 to vector<8x512xf32>
    %15 = arith.maximumf %13, %14 : vector<8x512xf32>
    %16 = arith.truncf %15 : vector<8x512xf32> to vector<8x512xbf16>
    %c0_12 = arith.constant 0 : index
    %c0_13 = arith.constant 0 : index
    %17 = vector.load %arg6[%c0_12, %c0_13] : memref<512x128xbf16, #tpu.memory_space<vmem>>, vector<512x128xbf16>
    %cst_14 = arith.constant dense<0.000000e+00> : vector<8x128xf32>
    %18 = tpu.matmul %16, %17, %cst_14 {dimension_numbers = #tpu.dot_dimension_numbers<[1], [0], [0], [1], [0, 0, 1, 1], [], []>} : vector<8x512xbf16>, vector<512x128xbf16>, vector<8x128xf32> -> vector<8x128xf32>
    %c0_15 = arith.constant 0 : index
    %c0_16 = arith.constant 0 : index
    %19 = vector.load %arg7[%c0_15, %c0_16] : memref<1x128xf32, #tpu.memory_space<vmem>>, vector<1x128xf32>
    %20 = vector.broadcast %19 : vector<1x128xf32> to vector<8x128xf32>
    %21 = arith.addf %18, %20 : vector<8x128xf32>
    %cst_17 = arith.constant 0.000000e+00 : f32
    %22 = vector.broadcast %cst_17 : f32 to vector<8x128xf32>
    %23 = arith.subf %22, %21 : vector<8x128xf32>
    %24 = math.exp %23 : vector<8x128xf32>
    %cst_18 = arith.constant 1.000000e+00 : f32
    %25 = vector.broadcast %cst_18 : f32 to vector<8x128xf32>
    %26 = arith.addf %25, %24 : vector<8x128xf32>
    %27 = tpu.reciprocal %26 {approx = true} : vector<8x128xf32> -> vector<8x128xf32>
    %c0_19 = arith.constant 0 : index
    %c0_20 = arith.constant 0 : index
    %28 = vector.load %arg8[%c0_19, %c0_20] : memref<8x128xf32, #tpu.memory_space<vmem>>, vector<8x128xf32>
    tpu.vector_store %arg8[%c0_19, %c0_20], %27 {strides = array<i32>} : memref<8x128xf32, #tpu.memory_space<vmem>>, vector<8x128xf32>,
    return
  }
  func.func @transform_0(%arg0: i32) -> (i32, i32) {
    %c0_i32 = arith.constant 0 : i32
    %c0_i32_0 = arith.constant 0 : i32
    return %arg0, %c0_i32 : i32, i32
  }
  func.func @transform_1(%arg0: i32) -> (i32, i32) {
    %c0_i32 = arith.constant 0 : i32
    %c0_i32_0 = arith.constant 0 : i32
    %c0_i32_1 = arith.constant 0 : i32
    return %c0_i32, %c0_i32_0 : i32, i32
  }
  func.func @transform_2(%arg0: i32) -> (i32, i32) {
    %c0_i32 = arith.constant 0 : i32
    %c0_i32_0 = arith.constant 0 : i32
    %c0_i32_1 = arith.constant 0 : i32
    return %c0_i32, %c0_i32_0 : i32, i32
  }
  func.func @transform_3(%arg0: i32) -> (i32, i32) {
    %c0_i32 = arith.constant 0 : i32
    %c0_i32_0 = arith.constant 0 : i32
    %c0_i32_1 = arith.constant 0 : i32
    return %c0_i32, %c0_i32_0 : i32, i32
  }
  func.func @transform_4(%arg0: i32) -> (i32, i32) {
    %c0_i32 = arith.constant 0 : i32
    %c0_i32_0 = arith.constant 0 : i32
    %c0_i32_1 = arith.constant 0 : i32
    return %c0_i32, %c0_i32_0 : i32, i32
  }
  func.func @transform_5(%arg0: i32) -> (i32, i32) {
    %c0_i32 = arith.constant 0 : i32
    %c0_i32_0 = arith.constant 0 : i32
    %c0_i32_1 = arith.constant 0 : i32
    return %c0_i32, %c0_i32_0 : i32, i32
  }
  func.func @transform_6(%arg0: i32) -> (i32, i32) {
    %c0_i32 = arith.constant 0 : i32
    %c0_i32_0 = arith.constant 0 : i32
    %c0_i32_1 = arith.constant 0 : i32
    return %c0_i32, %c0_i32_0 : i32, i32
  }
  func.func @transform_7(%arg0: i32) -> (i32, i32) {
    %c0_i32 = arith.constant 0 : i32
    %c0_i32_0 = arith.constant 0 : i32
    return %arg0, %c0_i32 : i32, i32
  }
}

</mosaic_0001>

<bundles_post_ra>
// kernel: tpu_custom_call.1
= control target key start
LH: loop header
LB: loop body
LE: loop exit
PB: predicated region body
PF: predicated region fallthrough
CT: control target
= control target key end

     0   :  { %12 = vsyncpa [#allocation3], 0  ;;  %s1675_s0 = inlined_call_operand.hbm [shape: bf16[8,128], index: 0, kind: input, shape index: {}]   ;;  %s1676_s1 = inlined_call_operand.hbm [shape: bf16[128,256], index: 1, kind: input, shape index: {}]   ;;  %s1677_s2 = inlined_call_operand.vmem [shape: f32[1,256], index: 2, kind: input, shape index: {}]   ;;  %s1678_s3 = inlined_call_operand.hbm [shape: bf16[256,512], index: 3, kind: input, shape index: {}]   ;;  %s1679_s4 = inlined_call_operand.vmem [shape: f32[1,512], index: 4, kind: input, shape index: {}]   ;;  %s1680_s5 = inlined_call_operand.hbm [shape: bf16[512,128], index: 5, kind: input, shape index: {}]   ;;  %s1681_s6 = inlined_call_operand.vmem [shape: f32[1,128], index: 6, kind: input, shape index: {}]   ;;  %s1682_s7 = inlined_call_operand.hbm [shape: f32[8,128], index: 7, kind: output, shape index: {}]  }
   0x1   :  { %13 = vsyncpa [#allocation6], 0 }
   0x2   :  { %14 = vsyncpa [#allocation9], 0 }
   0x3   :  { %15 = vsyncpa [#allocation4], 0  ;;  %s1540_s24 = smov [#allocation5]   ;;  %s1422_s28 = scalar_lea.hbm %s1676_s1, 2048 }
   0x4   :  { %s31_s25 = sshll.u32 %s1540_s24, 4  ;;  %p1423_p0 = scmp.ne.s32.totalorder %s1676_s1, %s1422_s28  ;;  %s32_s25 = int_to_ptr.vmem [resolvable:$true] %s31_s25 }
   0x5   :  { %p1426_p1 = scmp.lt.u32.totalorder %s1422_s28, %s1676_s1 }
   0x7   :  { %p1428_p2 = pnand %p1426_p1, %p1423_p0 }
   0x9   :  { %1431 = shalt.err (!%p1428_p2)
}
   0xa   :  { %s1432_s10 = scalar_lea.vmem %s32_s25, 2048  ;;  %p1437_p4 = scmp.lt.s32.totalorder %s32_s25, %s32_s25 }
   0xb   :  { %p1433_p3 = scmp.ne.s32.totalorder %s32_s25, %s1432_s10  ;;  %p1438_p5 = scmp.lt.s32.totalorder %s1432_s10, %s1432_s10 }
   0xd   :  { %p1439_p6 = por %p1438_p5, %p1437_p4 }
   0xf   :  { %p1440_p7 = pnand %p1439_p6, %p1433_p3 }
  0x11   :  { %1443 = shalt.err (!%p1440_p7)
}
  0x12   :  { %s1541_s11 = smov 128   ;;  %s1542_s12 = smov 8  }
  0x13   :  { %37 = dma.hbm_to_vmem [thread:$0]  %s1676_s1, 2048, %s32_s25, [#allocation6], %s1541_s11, %s1541_s11, %s1542_s12  }
  0x14   :  { %s1543_s15 = smov [#allocation2]   ;;  %s1544_s17 = smov [#allocation7]  }
  0x15   :  { %s22_s16 = sshll.u32 %s1543_s15, 4  ;;  %s45_s18 = sshll.u32 %s1544_s17, 4  ;;  %s23_s16 = int_to_ptr.vmem [resolvable:$true] %s22_s16  ;;  %s46_s18 = int_to_ptr.vmem [resolvable:$true] %s45_s18 }
  0x16   :  { %s1444_s21 = scalar_lea.hbm %s1675_s0, 64 }
  0x17   :  { %p1445_p8 = scmp.ne.s32.totalorder %s1675_s0, %s1444_s21  ;;  %p1448_p9 = scmp.lt.u32.totalorder %s1444_s21, %s1675_s0 }
  0x19   :  { %p1450_p10 = pnand %p1448_p9, %p1445_p8 }
  0x1b   :  { %1453 = shalt.err (!%p1450_p10)
}
  0x1c   :  { %s1454_s1 = scalar_lea.vmem %s23_s16, 64  ;;  %p1459_p12 = scmp.lt.s32.totalorder %s23_s16, %s23_s16 }
  0x1d   :  { %p1455_p11 = scmp.ne.s32.totalorder %s23_s16, %s1454_s1  ;;  %p1460_p13 = scmp.lt.s32.totalorder %s1454_s1, %s1454_s1 }
  0x1f   :  { %p1461_p0 = por %p1460_p13, %p1459_p12 }
  0x21   :  { %p1462_p1 = pnand %p1461_p0, %p1455_p11 }
  0x23   :  { %1465 = shalt.err (!%p1462_p1)
}
  0x24   :  { %25 = dma.hbm_to_vmem [thread:$0]  %s1675_s0, 64, %s23_s16, [#allocation3]  }
  0x25   :  { %s1466_s30 = scalar_lea.hbm %s1678_s3, 8192 }
  0x26   :  { %p1467_p2 = scmp.ne.s32.totalorder %s1678_s3, %s1466_s30  ;;  %p1470_p3 = scmp.lt.u32.totalorder %s1466_s30, %s1678_s3 }
  0x28   :  { %p1472_p4 = pnand %p1470_p3, %p1467_p2 }
  0x2a   :  { %1475 = shalt.err (!%p1472_p4)
}
  0x2b   :  { %s1476_s12 = scalar_lea.vmem %s46_s18, 8192  ;;  %p1481_p6 = scmp.lt.s32.totalorder %s46_s18, %s46_s18 }
  0x2c   :  { %p1477_p5 = scmp.ne.s32.totalorder %s46_s18, %s1476_s12  ;;  %p1482_p7 = scmp.lt.s32.totalorder %s1476_s12, %s1476_s12 }
  0x2e   :  { %p1483_p8 = por %p1482_p7, %p1481_p6 }
  0x30   :  { %p1484_p9 = pnand %p1483_p8, %p1477_p5 }
  0x32   :  { %1487 = shalt.err (!%p1484_p9)
}
  0x33   :  { %s1545_s0 = smov 256   ;;  %s1546_s13 = smov 16  }
  0x34   :  { %51 = dma.hbm_to_vmem [thread:$0]  %s1678_s3, 8192, %s46_s18, [#allocation6], %s1545_s0, %s1545_s0, %s1546_s13  }
  0x35   :  { %s1547_s16 = smov [#allocation8]   ;;  %s1488_s21 = scalar_lea.hbm %s1680_s5, 4096 }
  0x36   :  { %s59_s17 = sshll.u32 %s1547_s16, 4  ;;  %p1489_p10 = scmp.ne.s32.totalorder %s1680_s5, %s1488_s21  ;;  %s60_s17 = int_to_ptr.vmem [resolvable:$true] %s59_s17 }
  0x37   :  { %p1492_p11 = scmp.lt.u32.totalorder %s1488_s21, %s1680_s5 }
  0x39   :  { %p1494_p12 = pnand %p1492_p11, %p1489_p10 }
  0x3b   :  { %1497 = shalt.err (!%p1494_p12)
}
  0x3c   :  { %s1498_s1 = scalar_lea.vmem %s60_s17, 4096  ;;  %p1503_p0 = scmp.lt.s32.totalorder %s60_s17, %s60_s17 }
  0x3d   :  { %p1499_p13 = scmp.ne.s32.totalorder %s60_s17, %s1498_s1  ;;  %p1504_p1 = scmp.lt.s32.totalorder %s1498_s1, %s1498_s1 }
  0x3f   :  { %p1505_p2 = por %p1504_p1, %p1503_p0 }
  0x41   :  { %p1506_p3 = pnand %p1505_p2, %p1499_p13 }
  0x43   :  { %1509 = shalt.err (!%p1506_p3)
}
  0x44   :  { %s1548_s3 = smov 64   ;;  %s1549_s18 = smov 4  }
  0x45   :  { %65 = dma.hbm_to_vmem [thread:$0]  %s1680_s5, 4096, %s60_s17, [#allocation9], %s1548_s3, %s1548_s3, %s1549_s18  }
  0x46   :  { %1532 = dma.done.wait [#allocation3], 64  }
  0x47   :  { %1533 = vsyncadd [#allocation3], 4294967232 }
  0x48   :  { %1534 = dma.done.wait [#allocation6], 10240  }
  0x49   :  { %1535 = vsyncadd [#allocation6], 4294957056 }
  0x4a   :  { %1536 = dma.done.wait [#allocation9], 4096  }
  0x4b   :  { %1537 = vsyncadd [#allocation9], 4294963200  ;;  %v1550_v0 = vmov 0   ;;  %v1266_v1 = vld [vmem:[#allocation5 + $0x4] ss:$8 sps:$4 sm:$0xff]   ;;  %s1551_s8 = smov [#allocation10]  }
  0x4c   :  { %222 = vmatprep.mubr.bf16.mxu0 %v1550_v0  ;;  %v1268_v2 = vld [vmem:[#allocation5] ss:$8 sps:$4 sm:$0xff]   ;;  %190 = vmatprep.subr.bf16.mxu0 %v1266_v1  ;;  %v1269_v3 = vld [vmem:[#allocation5 + $0x14] ss:$8 sps:$4 sm:$0xff]   ;;  %v1271_v4 = vld [vmem:[#allocation5 + $0x10] ss:$8 sps:$4 sm:$0xff]  }
  0x4d   :  { %191 = vmatpush1.bf16.msra.mxu0 %v1268_v2  ;;  %v1272_v5 = vld [vmem:[#allocation5 + $0x24] ss:$8 sps:$4 sm:$0xff]   ;;  %v1274_v6 = vld [vmem:[#allocation5 + $0x20] ss:$8 sps:$4 sm:$0xff]   ;;  %v1275_v7 = vld [vmem:[#allocation5 + $0x34] ss:$8 sps:$4 sm:$0xff]  }
  0x4e   :  { %192 = vmatprep.subr.bf16.mxu0 %v1269_v3  ;;  %v1277_v8 = vld [vmem:[#allocation5 + $0x30] ss:$8 sps:$4 sm:$0xff]   ;;  %v1290_v9 = vld [vmem:[#allocation7 + $0x4] ss:$16 sps:$4 sm:$0xff]   ;;  %v1280_v13 = vld [vmem:[#allocation5 + $0x40] ss:$8 sps:$4 sm:$0xff]  }
  0x4f   :  { %v1278_v10 = vld [vmem:[#allocation5 + $0x44] ss:$8 sps:$4 sm:$0xff]   ;;  %641 = vmatprep.subr.bf16.mxu1 %v1290_v9  ;;  %v1295_v11 = vld [vmem:[#allocation7] ss:$16 sps:$4 sm:$0xff]   ;;  %v1281_v14 = vld [vmem:[#allocation5 + $0x54] ss:$8 sps:$4 sm:$0xff]  }
  0x50   :  { %v1296_v12 = vld [vmem:[#allocation7 + $0x24] ss:$16 sps:$4 sm:$0xff]   ;;  %642 = vmatpush1.bf16.msra.mxu1 %v1295_v11  ;;  %v1301_v15 = vld [vmem:[#allocation7 + $0x20] ss:$16 sps:$4 sm:$0xff]   ;;  %v1294_v26 = vld [vmem:[#allocation7 + $0xc] ss:$16 sps:$4 sm:$0xff]  }
  0x51   :  { %193 = vmatpush1.bf16.msra.mxu0 %v1271_v4  ;;  %643 = vmatprep.subr.bf16.mxu1 %v1296_v12  ;;  %v1302_v16 = vld [vmem:[#allocation7 + $0x44] ss:$16 sps:$4 sm:$0xff]   ;;  %v1283_v17 = vld [vmem:[#allocation5 + $0x50] ss:$8 sps:$4 sm:$0xff]   ;;  %v1286_v21 = vld [vmem:[#allocation5 + $0x60] ss:$8 sps:$4 sm:$0xff]  }
  0x52   :  { %194 = vmatprep.subr.bf16.mxu0 %v1272_v5  ;;  %v1284_v18 = vld [vmem:[#allocation5 + $0x64] ss:$8 sps:$4 sm:$0xff]   ;;  %v1307_v19 = vld [vmem:[#allocation7 + $0x40] ss:$16 sps:$4 sm:$0xff]   ;;  %v1287_v22 = vld [vmem:[#allocation5 + $0x74] ss:$8 sps:$4 sm:$0xff]  }
  0x53   :  { %v1308_v20 = vld [vmem:[#allocation7 + $0x64] ss:$16 sps:$4 sm:$0xff]   ;;  %v1313_v23 = vld [vmem:[#allocation7 + $0x60] ss:$16 sps:$4 sm:$0xff]   ;;  %v81_v29 = vld [vmem:[#allocation2] sm:$0xf] }
  0x54   :  { %644 = vmatpush1.bf16.msra.mxu1 %v1301_v15  ;;  %v1314_v24 = vld [vmem:[#allocation7 + $0x84] ss:$16 sps:$4 sm:$0xff]   ;;  %v1289_v25 = vld [vmem:[#allocation5 + $0x70] ss:$8 sps:$4 sm:$0xff]   ;;  %v1300_v31 = vld [vmem:[#allocation7 + $0x2c] ss:$16 sps:$4 sm:$0xff]  }
  0x55   :  { %195 = vmatpush1.bf16.msra.mxu0 %v1274_v6  ;;  %645 = vmatprep.subr.bf16.mxu1 %v1302_v16  ;;  %v1319_v27 = vld [vmem:[#allocation7 + $0x80] ss:$16 sps:$4 sm:$0xff]   ;;  %v1320_v28 = vld [vmem:[#allocation7 + $0xa4] ss:$16 sps:$4 sm:$0xff]   ;;  %v1292_v30 = vld [vmem:[#allocation7 + $0x8] ss:$16 sps:$4 sm:$0xff]  }
  0x56   :  { %196 = vmatprep.subr.bf16.mxu0 %v1275_v7  ;;  %v1325_v32 = vld [vmem:[#allocation7 + $0xa0] ss:$16 sps:$4 sm:$0xff]   ;;  %v1326_v33 = vld [vmem:[#allocation7 + $0xc4] ss:$16 sps:$4 sm:$0xff]   ;;  %v1298_v34 = vld [vmem:[#allocation7 + $0x28] ss:$16 sps:$4 sm:$0xff]  }
  0x57   :  { %v1306_v35 = vld [vmem:[#allocation7 + $0x4c] ss:$16 sps:$4 sm:$0xff]   ;;  %v1331_v36 = vld [vmem:[#allocation7 + $0xc0] ss:$16 sps:$4 sm:$0xff]   ;;  %v1332_v37 = vld [vmem:[#allocation7 + $0xe4] ss:$16 sps:$4 sm:$0xff]  }
  0x58   :  { %646 = vmatpush1.bf16.msra.mxu1 %v1307_v19  ;;  %v1304_v38 = vld [vmem:[#allocation7 + $0x48] ss:$16 sps:$4 sm:$0xff]   ;;  %v1312_v39 = vld [vmem:[#allocation7 + $0x6c] ss:$16 sps:$4 sm:$0xff]   ;;  %v1337_v40 = vld [vmem:[#allocation7 + $0xe0] ss:$16 sps:$4 sm:$0xff]  }
  0x59   :  { %197 = vmatpush1.bf16.msra.mxu0 %v1277_v8  ;;  %647 = vmatprep.subr.bf16.mxu1 %v1308_v20  ;;  %v1338_v41 = vld [vmem:[#allocation7 + $0x104] ss:$16 sps:$4 sm:$0xff]   ;;  %v1310_v42 = vld [vmem:[#allocation7 + $0x68] ss:$16 sps:$4 sm:$0xff]   ;;  %v1318_v43 = vld [vmem:[#allocation7 + $0x8c] ss:$16 sps:$4 sm:$0xff]   ;;  %v100_v20 = vlaneseq }
  0x5a   :  { %198 = vmatprep.subr.bf16.mxu0 %v1278_v10  ;;  %v1343_v44 = vld [vmem:[#allocation7 + $0x100] ss:$16 sps:$4 sm:$0xff]   ;;  %v1344_v45 = vld [vmem:[#allocation7 + $0x124] ss:$16 sps:$4 sm:$0xff]   ;;  %v1316_v46 = vld [vmem:[#allocation7 + $0x88] ss:$16 sps:$4 sm:$0xff]  }
  0x5b   :  { %v1349_v47 = vld [vmem:[#allocation7 + $0x120] ss:$16 sps:$4 sm:$0xff]   ;;  %v1324_v48 = vld [vmem:[#allocation7 + $0xac] ss:$16 sps:$4 sm:$0xff]   ;;  %v1350_v49 = vld [vmem:[#allocation7 + $0x144] ss:$16 sps:$4 sm:$0xff]  }
  0x5c   :  { %648 = vmatpush1.bf16.msra.mxu1 %v1313_v23  ;;  %v1322_v50 = vld [vmem:[#allocation7 + $0xa8] ss:$16 sps:$4 sm:$0xff]   ;;  %v1355_v51 = vld [vmem:[#allocation7 + $0x140] ss:$16 sps:$4 sm:$0xff]   ;;  %v1330_v52 = vld [vmem:[#allocation7 + $0xcc] ss:$16 sps:$4 sm:$0xff]  }
  0x5d   :  { %199 = vmatpush1.bf16.msra.mxu0 %v1280_v13  ;;  %649 = vmatprep.subr.bf16.mxu1 %v1314_v24  ;;  %v1356_v53 = vld [vmem:[#allocation7 + $0x164] ss:$16 sps:$4 sm:$0xff]   ;;  %v1328_v54 = vld [vmem:[#allocation7 + $0xc8] ss:$16 sps:$4 sm:$0xff]   ;;  %v1361_v55 = vld [vmem:[#allocation7 + $0x160] ss:$16 sps:$4 sm:$0xff]  }
  0x5e   :  { %200 = vmatprep.subr.bf16.mxu0 %v1281_v14  ;;  %v1336_v56 = vld [vmem:[#allocation7 + $0xec] ss:$16 sps:$4 sm:$0xff]   ;;  %v1362_v57 = vld [vmem:[#allocation7 + $0x184] ss:$16 sps:$4 sm:$0xff]   ;;  %v1334_v58 = vld [vmem:[#allocation7 + $0xe8] ss:$16 sps:$4 sm:$0xff]  }
  0x5f   :  { %v1367_v59 = vld [vmem:[#allocation7 + $0x180] ss:$16 sps:$4 sm:$0xff]   ;;  %v1342_v60 = vld [vmem:[#allocation7 + $0x10c] ss:$16 sps:$4 sm:$0xff]   ;;  %v1368_v61 = vld [vmem:[#allocation7 + $0x1a4] ss:$16 sps:$4 sm:$0xff]  }
  0x60   :  { %650 = vmatpush1.bf16.msra.mxu1 %v1319_v27  ;;  %v1340_v62 = vld [vmem:[#allocation7 + $0x108] ss:$16 sps:$4 sm:$0xff]   ;;  %v1373_v63 = vld [vmem:[#allocation7 + $0x1a0] ss:$16 sps:$4 sm:$0xff]   ;;  %v1348_v0 = vld [vmem:[#allocation7 + $0x12c] ss:$16 sps:$4 sm:$0xff]  }
  0x61   :  { %201 = vmatpush1.bf16.msra.mxu0 %v1283_v17  ;;  %651 = vmatprep.subr.bf16.mxu1 %v1320_v28  ;;  %v1346_v1 = vld [vmem:[#allocation7 + $0x128] ss:$16 sps:$4 sm:$0xff]   ;;  %v1354_v2 = vld [vmem:[#allocation7 + $0x14c] ss:$16 sps:$4 sm:$0xff]   ;;  %v1374_v10 = vld [vmem:[#allocation7 + $0x1c4] ss:$16 sps:$4 sm:$0xff]  }
  0x62   :  { %202 = vmatprep.subr.bf16.mxu0 %v1284_v18  ;;  %v1352_v3 = vld [vmem:[#allocation7 + $0x148] ss:$16 sps:$4 sm:$0xff]   ;;  %v1360_v4 = vld [vmem:[#allocation7 + $0x16c] ss:$16 sps:$4 sm:$0xff]   ;;  %v1379_v13 = vld [vmem:[#allocation7 + $0x1c0] ss:$16 sps:$4 sm:$0xff]  }
  0x63   :  { %v1358_v5 = vld [vmem:[#allocation7 + $0x168] ss:$16 sps:$4 sm:$0xff]   ;;  %v1366_v6 = vld [vmem:[#allocation7 + $0x18c] ss:$16 sps:$4 sm:$0xff]   ;;  %v1380_v14 = vld [vmem:[#allocation7 + $0x1e4] ss:$16 sps:$4 sm:$0xff]  }
  0x64   :  { %652 = vmatpush1.bf16.msra.mxu1 %v1325_v32  ;;  %v1364_v7 = vld [vmem:[#allocation7 + $0x188] ss:$16 sps:$4 sm:$0xff]   ;;  %v1372_v8 = vld [vmem:[#allocation7 + $0x1ac] ss:$16 sps:$4 sm:$0xff]   ;;  %v1385_v17 = vld [vmem:[#allocation7 + $0x1e0] ss:$16 sps:$4 sm:$0xff]  }
  0x65   :  { %203 = vmatpush1.bf16.msra.mxu0 %v1286_v21  ;;  %653 = vmatprep.subr.bf16.mxu1 %v1326_v33  ;;  %v1370_v9 = vld [vmem:[#allocation7 + $0x1a8] ss:$16 sps:$4 sm:$0xff]   ;;  %v1378_v11 = vld [vmem:[#allocation7 + $0x1cc] ss:$16 sps:$4 sm:$0xff]   ;;  %v1386_v18 = vld [vmem:[#allocation8 + $0x40] sm:$0xff]   ;;  %v1640_v21 = vshrl.u32 %v100_v20, 7 }
  0x66   :  { %204 = vmatprep.subr.bf16.mxu0 %v1287_v22  ;;  %v1376_v12 = vld [vmem:[#allocation7 + $0x1c8] ss:$16 sps:$4 sm:$0xff]   ;;  %v1384_v15 = vld [vmem:[#allocation7 + $0x1ec] ss:$16 sps:$4 sm:$0xff]   ;;  %v1387_v19 = vld [vmem:[#allocation8 + $0xc0] sm:$0xff]   ;;  %s1086_s9 = sshll.u32 %s1551_s8, 4  ;;  %s1087_s9 = int_to_ptr.vmem [resolvable:$true] %s1086_s9 }
  0x67   :  { %v1382_v16 = vld [vmem:[#allocation7 + $0x1e8] ss:$16 sps:$4 sm:$0xff]   ;;  %v102_v22 = vsub.s32 0, %v1640_v21  ;;  %v98_v23 = vld [vmem:[%s1677_s2] sm:$0x3]  ;;  %v106_v24 = vsub.s32 1, %v1640_v21  ;;  %p1515_p5 = scmp.lt.s32.totalorder %s1087_s9, %s1087_s9 }
  0x68   :  { %654 = vmatpush1.bf16.msra.mxu1 %v1331_v36  ;;  %v1388_v36 = vld [vmem:[#allocation8] sm:$0xff]  }
  0x69   :  { %205 = vmatpush1.bf16.msra.mxu0 %v1289_v25  ;;  %655 = vmatprep.subr.bf16.mxu1 %v1332_v37  ;;  %v103_v25 = vrot.slane %v98_v23, %v102_v22  ;;  %v1389_v37 = vld [vmem:[#allocation8 + $0x80] sm:$0xff]  }
  0x6a   :  { %682 = vmatprep.subr.bf16.mxu0 %v1294_v26  ;;  %v107_v26 = vrot.slane %v98_v23, %v106_v24 }
  0x6c   :  { %223 = vmatmul.mubr.bf16.vlgmr.msra.gmra.mrb[0].mxu0 %v81_v29  ;;  %656 = vmatpush1.bf16.msra.mxu1 %v1337_v40  ;;  %v1391_v40 = vld [vmem:[#allocation8 + $0xc8] sm:$0xff]  }
  0x6d   :  { %683 = vmatpush1.bf16.msra.mxu0 %v1292_v30  ;;  %657 = vmatprep.subr.bf16.mxu1 %v1338_v41  ;;  %v1392_v41 = vld [vmem:[#allocation8 + $0x8] sm:$0xff]  }
  0x6e   :  { %684 = vmatprep.subr.bf16.mxu0 %v1300_v31 }
  0x70   :  { %658 = vmatpush1.bf16.msra.mxu1 %v1343_v44  ;;  %v1395_v44 = vld [vmem:[#allocation8 + $0xd0] sm:$0xff]  }
  0x71   :  { %685 = vmatpush1.bf16.msra.mxu0 %v1298_v34  ;;  %659 = vmatprep.subr.bf16.mxu1 %v1344_v45  ;;  %v1396_v45 = vld [vmem:[#allocation8 + $0x10] sm:$0xff]  }
  0x72   :  { %686 = vmatprep.subr.bf16.mxu0 %v1306_v35 }
  0x74   :  { %660 = vmatpush1.bf16.msra.mxu1 %v1349_v47  ;;  %v1398_v47 = vld [vmem:[#allocation8 + $0x58] sm:$0xff]  }
  0x75   :  { %687 = vmatpush1.bf16.msra.mxu0 %v1304_v38  ;;  %661 = vmatprep.subr.bf16.mxu1 %v1350_v49  ;;  %v1400_v49 = vld [vmem:[#allocation8 + $0x18] sm:$0xff]  }
  0x76   :  { %688 = vmatprep.subr.bf16.mxu0 %v1312_v39  ;;  %v1390_v39 = vld [vmem:[#allocation8 + $0x48] sm:$0xff]  }
  0x78   :  { %662 = vmatpush1.bf16.msra.mxu1 %v1355_v51  ;;  %v1402_v51 = vld [vmem:[#allocation8 + $0x60] sm:$0xff]  }
  0x79   :  { %689 = vmatpush1.bf16.msra.mxu0 %v1310_v42  ;;  %663 = vmatprep.subr.bf16.mxu1 %v1356_v53  ;;  %v1393_v42 = vld [vmem:[#allocation8 + $0x88] sm:$0xff]   ;;  %v1404_v53 = vld [vmem:[#allocation8 + $0x20] sm:$0xff]  }
  0x7a   :  { %690 = vmatprep.subr.bf16.mxu0 %v1318_v43  ;;  %v1394_v43 = vld [vmem:[#allocation8 + $0x50] sm:$0xff]  }
  0x7c   :  { %664 = vmatpush1.bf16.msra.mxu1 %v1361_v55  ;;  %v1406_v55 = vld [vmem:[#allocation8 + $0x68] sm:$0xff]  }
  0x7d   :  { %691 = vmatpush1.bf16.msra.mxu0 %v1316_v46  ;;  %665 = vmatprep.subr.bf16.mxu1 %v1362_v57  ;;  %v1397_v46 = vld [vmem:[#allocation8 + $0x90] sm:$0xff]   ;;  %v1408_v57 = vld [vmem:[#allocation8 + $0x28] sm:$0xff]  }
  0x7e   :  { %692 = vmatprep.subr.bf16.mxu0 %v1324_v48  ;;  %v1399_v48 = vld [vmem:[#allocation8 + $0xd8] sm:$0xff]  }
  0x80   :  { %666 = vmatpush1.bf16.msra.mxu1 %v1367_v59  ;;  %v1410_v59 = vld [vmem:[#allocation8 + $0x70] sm:$0xff]  }
  0x81   :  { %693 = vmatpush1.bf16.msra.mxu0 %v1322_v50  ;;  %667 = vmatprep.subr.bf16.mxu1 %v1368_v61  ;;  %v1401_v50 = vld [vmem:[#allocation8 + $0x98] sm:$0xff]   ;;  %v1412_v61 = vld [vmem:[#allocation8 + $0x30] sm:$0xff]  }
  0x82   :  { %694 = vmatprep.subr.bf16.mxu0 %v1330_v52  ;;  %v1403_v52 = vld [vmem:[#allocation8 + $0xe0] sm:$0xff]  }
  0x84   :  { %668 = vmatpush1.bf16.msra.mxu1 %v1373_v63  ;;  %v1414_v63 = vld [vmem:[#allocation8 + $0x78] sm:$0xff]  }
  0x85   :  { %695 = vmatpush1.bf16.msra.mxu0 %v1328_v54  ;;  %669 = vmatprep.subr.bf16.mxu1 %v1374_v10  ;;  %v1405_v54 = vld [vmem:[#allocation8 + $0xa0] sm:$0xff]  }
  0x86   :  { %696 = vmatprep.subr.bf16.mxu0 %v1336_v56  ;;  %v1407_v56 = vld [vmem:[#allocation8 + $0xe8] sm:$0xff]  }
  0x88   :  { %670 = vmatpush1.bf16.msra.mxu1 %v1379_v13 }
  0x89   :  { %697 = vmatpush1.bf16.msra.mxu0 %v1334_v58  ;;  %671 = vmatprep.subr.bf16.mxu1 %v1380_v14  ;;  %v1409_v58 = vld [vmem:[#allocation8 + $0xa8] sm:$0xff]  }
  0x8a   :  { %698 = vmatprep.subr.bf16.mxu0 %v1342_v60  ;;  %v1411_v60 = vld [vmem:[#allocation8 + $0xf0] sm:$0xff]  }
  0x8c   :  { %672 = vmatpush1.bf16.msra.mxu1 %v1385_v17 }
  0x8d   :  { %699 = vmatpush1.bf16.msra.mxu0 %v1340_v62  ;;  %1210 = vmatprep.subr.bf16.mxu1 %v1386_v18  ;;  %v1413_v62 = vld [vmem:[#allocation8 + $0xb0] sm:$0xff]  }
  0x8e   :  { %700 = vmatprep.subr.bf16.mxu0 %v1348_v0  ;;  %v1415_v0 = vld [vmem:[#allocation8 + $0xf8] sm:$0xff]  }
  0x91   :  { %701 = vmatpush1.bf16.msra.mxu0 %v1346_v1  ;;  %v1416_v1 = vld [vmem:[#allocation8 + $0x38] sm:$0xff]  }
  0x92   :  { %702 = vmatprep.subr.bf16.mxu0 %v1354_v2  ;;  %v1417_v2 = vld [vmem:[#allocation8 + $0xb8] sm:$0xff]  }
  0x95   :  { %703 = vmatpush1.bf16.msra.mxu0 %v1352_v3  ;;  %v311_v3 = vsub.s32 2, %v1640_v21 }
  0x96   :  { %704 = vmatprep.subr.bf16.mxu0 %v1360_v4  ;;  %v299_v4 = vld [vmem:[%s1679_s4] sm:$0xf] }
  0x99   :  { %705 = vmatpush1.bf16.msra.mxu0 %v1358_v5  ;;  %v315_v5 = vsub.s32 3, %v1640_v21 }
  0x9a   :  { %706 = vmatprep.subr.bf16.mxu0 %v1366_v6  ;;  %v304_v6 = vrot.slane %v299_v4, %v102_v22 }
  0x9d   :  { %707 = vmatpush1.bf16.msra.mxu0 %v1364_v7  ;;  %v312_v7 = vrot.slane %v299_v4, %v311_v3 }
  0x9e   :  { %708 = vmatprep.subr.bf16.mxu0 %v1372_v8  ;;  %v308_v8 = vrot.slane %v299_v4, %v106_v24 }
  0xa1   :  { %709 = vmatpush1.bf16.msra.mxu0 %v1370_v9  ;;  %v316_v9 = vrot.slane %v299_v4, %v315_v5 }
  0xa2   :  { %710 = vmatprep.subr.bf16.mxu0 %v1378_v11 }
  0xa5   :  { %711 = vmatpush1.bf16.msra.mxu0 %v1376_v12 }
  0xa6   :  { %712 = vmatprep.subr.bf16.mxu0 %v1384_v15 }
  0xa9   :  { %713 = vmatpush1.bf16.msra.mxu0 %v1382_v16 }
  0xaa   :  { %1232 = vmatprep.subr.bf16.mxu0 %v1387_v19 }
 0x13f   :  { %v224_v27 = vpop.f32.mrb[0].mxu0 }
 0x140   :  { %v225_v28 = vadd.f32 %v224_v27, %v103_v25  ;;  %v226_v29 = vpop.f32.mrb[1].mxu0 }
 0x141   :  { %v227_v30 = vadd.f32 %v226_v29, %v107_v26  ;;  %v228_v31 = vpop.f32.mrb[2].mxu0 }
 0x142   :  { %v231_v32 = vmax.f32 %v225_v28, 0.0  ;;  %v229_v33 = vpop.f32.mrb[3].mxu0 }
 0x143   :  { %v232_v34 = vmax.f32 %v227_v30, 0.0 }
 0x144   :  { %v233_v38 = vpack.c.bf16 %v231_v32, %v231_v32  ;;  %v1177_v32 = vld [vmem:[%s1681_s6] ss:$0 sm:$0xff]  ;;  %s1510_s6 = scalar_lea.vmem %s1087_s9, 128 }
 0x145   :  { %v234_v35 = vpack.c.bf16 %v232_v34, %v232_v34  ;;  %p1511_p4 = scmp.ne.s32.totalorder %s1087_s9, %s1510_s6  ;;  %p1516_p6 = scmp.lt.s32.totalorder %s1510_s6, %s1510_s6 }
 0x147   :  { %673 = vmatprep.mubr.bf16.mxu1 %v234_v35  ;;  %714 = vmatprep.mubr.bf16.mxu0 %v234_v35  ;;  %p1517_p7 = por %p1516_p6, %p1515_p5 }
 0x148   :  { %674 = vmatmul.mubr.bf16.vlgmr.msra.gmra.mrb[0].mxu1 %v233_v38  ;;  %715 = vmatmul.mubr.bf16.vlgmr.msra.gmra.mrb[4].mxu0 %v233_v38 }
 0x149   :  { %1211 = vmatpush3.bf16.msra.mxu1 %v1388_v36  ;;  %1233 = vmatpush3.bf16.msra.mxu0 %v1389_v37  ;;  %p1518_p8 = pnand %p1517_p7, %p1511_p4 }
 0x14a   :  { %1212 = vmatprep.subr.bf16.mxu1 %v1390_v39  ;;  %1234 = vmatprep.subr.bf16.mxu0 %v1391_v40 }
 0x14d   :  { %1213 = vmatpush3.bf16.msra.mxu1 %v1392_v41  ;;  %1235 = vmatpush3.bf16.msra.mxu0 %v1393_v42 }
 0x14e   :  { %1214 = vmatprep.subr.bf16.mxu1 %v1394_v43  ;;  %1236 = vmatprep.subr.bf16.mxu0 %v1395_v44 }
 0x151   :  { %1215 = vmatpush3.bf16.msra.mxu1 %v1396_v45  ;;  %1237 = vmatpush3.bf16.msra.mxu0 %v1397_v46 }
 0x152   :  { %1216 = vmatprep.subr.bf16.mxu1 %v1398_v47  ;;  %1238 = vmatprep.subr.bf16.mxu0 %v1399_v48 }
 0x155   :  { %1217 = vmatpush3.bf16.msra.mxu1 %v1400_v49  ;;  %1239 = vmatpush3.bf16.msra.mxu0 %v1401_v50 }
 0x156   :  { %1218 = vmatprep.subr.bf16.mxu1 %v1402_v51  ;;  %1240 = vmatprep.subr.bf16.mxu0 %v1403_v52 }
 0x159   :  { %1219 = vmatpush3.bf16.msra.mxu1 %v1404_v53  ;;  %1241 = vmatpush3.bf16.msra.mxu0 %v1405_v54 }
 0x15a   :  { %1220 = vmatprep.subr.bf16.mxu1 %v1406_v55  ;;  %1242 = vmatprep.subr.bf16.mxu0 %v1407_v56 }
 0x15d   :  { %1221 = vmatpush3.bf16.msra.mxu1 %v1408_v57  ;;  %1243 = vmatpush3.bf16.msra.mxu0 %v1409_v58 }
 0x15e   :  { %1222 = vmatprep.subr.bf16.mxu1 %v1410_v59  ;;  %1244 = vmatprep.subr.bf16.mxu0 %v1411_v60 }
 0x161   :  { %1223 = vmatpush3.bf16.msra.mxu1 %v1412_v61  ;;  %1245 = vmatpush3.bf16.msra.mxu0 %v1413_v62 }
 0x162   :  { %1224 = vmatprep.subr.bf16.mxu1 %v1414_v63  ;;  %1246 = vmatprep.subr.bf16.mxu0 %v1415_v0 }
 0x165   :  { %1225 = vmatpush3.bf16.msra.mxu1 %v1416_v1  ;;  %1247 = vmatpush3.bf16.msra.mxu0 %v1417_v2 }
 0x21b   :  { %v675_v10 = vpop.f32.mrb[0].mxu1  ;;  %v716_v11 = vpop.f32.mrb[4].mxu0 }
 0x21c   :  { %v676_v12 = vadd.f32 %v675_v10, %v304_v6  ;;  %v717_v13 = vadd.f32 %v716_v11, %v312_v7  ;;  %v677_v14 = vpop.f32.mrb[1].mxu1  ;;  %v718_v15 = vpop.f32.mrb[5].mxu0 }
 0x21d   :  { %v678_v16 = vadd.f32 %v677_v14, %v308_v8  ;;  %v719_v17 = vadd.f32 %v718_v15, %v316_v9  ;;  %v679_v18 = vpop.f32.mrb[2].mxu1  ;;  %v720_v19 = vpop.f32.mrb[6].mxu0 }
 0x21e   :  { %v723_v20 = vmax.f32 %v676_v12, 0.0  ;;  %v725_v23 = vmax.f32 %v717_v13, 0.0  ;;  %v680_v25 = vpop.f32.mrb[3].mxu1  ;;  %v721_v26 = vpop.f32.mrb[7].mxu0 }
 0x21f   :  { %v724_v22 = vmax.f32 %v678_v16, 0.0  ;;  %v726_v27 = vmax.f32 %v719_v17, 0.0 }
 0x220   :  { %v727_v24 = vpack.c.bf16 %v723_v20, %v723_v20  ;;  %v729_v29 = vpack.c.bf16 %v725_v23, %v725_v23 }
 0x221   :  { %v728_v28 = vpack.c.bf16 %v724_v22, %v724_v22  ;;  %v730_v21 = vpack.c.bf16 %v726_v27, %v726_v27 }
 0x223   :  { %1026 = vmatprep.mubr.bf16.mxu1 %v728_v28  ;;  %1066 = vmatprep.mubr.bf16.mxu0 %v730_v21 }
 0x224   :  { %1027 = vmatmul.mubr.bf16.vlgmr.msra.gmra.mrb[4].mxu1 %v727_v24  ;;  %1067 = vmatmul.mubr.bf16.vlgmr.msra.gmra.mrb[8].mxu0 %v729_v29 }
 0x2f7   :  { %v1226_v30 = vpop.f32.mrb[4].mxu1  ;;  %v1248_v31 = vpop.f32.mrb[8].mxu0 }
 0x2f8   :  { %v1227_v33 = vpop.f32.mrb[5].mxu1  ;;  %v1249_v34 = vpop.f32.mrb[9].mxu0 }
 0x2f9   :  { %v1228_v35 = vadd.f32 %v1227_v33, %v1226_v30  ;;  %v1250_v36 = vadd.f32 %v1249_v34, %v1248_v31  ;;  %v1229_v37 = vpop.f32.mrb[6].mxu1  ;;  %v1251_v38 = vpop.f32.mrb[10].mxu0 }
 0x2fa   :  { %v1230_v39 = vpop.f32.mrb[7].mxu1  ;;  %v1252_v40 = vpop.f32.mrb[11].mxu0 }
 0x2fb   :  { %v1029_v41 = vadd.f32 %v1228_v35, %v1177_v32 }
 0x2fd   :  { %v1069_v42 = vadd.f32 %v1250_v36, %v1029_v41 }
 0x2ff   :  { %v1074_v43 = vsub.f32 0.0, %v1069_v42 }
 0x301   :  { %v1075_v44 = vmul.f32 1.442695, %v1074_v43 }
 0x303   :  { %1418 = vpow2.f32 %v1075_v44 }
 0x30d   :  { %v1419_v45 = vpop.eup %1418 }
 0x30e   :  { %v1077_v46 = vadd.f32 1.0, %v1419_v45 }
 0x310   :  { %1420 = vrcp.f32 %v1077_v46 }
 0x31a   :  { %v1421_v47 = vpop.eup %1420 }
 0x31b   :  { %1079 = vst [vmem:[#allocation10] sm:$0xff] %v1421_v47 }
 0x31c   :  { %1521 = shalt.err (!%p1518_p8)
}
 0x31d   :  { %s1522_s12 = scalar_lea.hbm %s1682_s7, 128 }
 0x31e   :  { %p1523_p9 = scmp.ne.s32.totalorder %s1682_s7, %s1522_s12  ;;  %p1526_p10 = scmp.lt.u32.totalorder %s1522_s12, %s1682_s7 }
 0x320   :  { %p1528_p11 = pnand %p1526_p10, %p1523_p9 }
 0x322   :  { %1531 = shalt.err (!%p1528_p11)
}
 0x323   :  { %1089 = dma.vmem_to_hbm [thread:$0]  %s1087_s9, 128, %s1682_s7, [#allocation4]  }
 0x324   :  { %1538 = dma.done.wait [#allocation4], 128  }
 0x325   :  { %1539 = vsyncadd [#allocation4], 4294967168 }
 0x326   :  { %1093 = vsyncpa [#allocation3], 1 }
 0x327   :  { %1094 = vsyncpa [#allocation6], 1 }
 0x328   :  { %1095 = vsyncpa [#allocation9], 1 }
 0x329   :  { %1096 = vsyncpa [#allocation4], 1 }

</bundles_post_ra>
